<compile_context>
chip_gen: v7x
topology: tpu7x:2x2x1
jax: 0.10.0
libtpu: 0.0.40
codegen_flags: <defaults>
</compile_context>

<pallas_src>
import functools

import jax
import jax.numpy as jnp
from jax.experimental import pallas as pl
from jax.experimental.pallas import tpu as pltpu

# Combined (input + output) bytes per grid step. Double-buffered footprint is
# 2x this (~8 MiB), safely under v5e's 16 MiB scoped-VMEM default while large
# enough to amortize per-step pipeline overhead on v6e/v7x.
_TARGET_BLOCK_BYTES = 4 * 1024 * 1024


def _blc_kernel(x_ref, o_ref, *, black_level, scale_inv):
    # Elementwise hot path: (x - black_level) * scale_inv, clamped to [0, 1].
    # Cast to f32 in-kernel so narrow (e.g. uint16) inputs stay narrow in HBM;
    # the VPU cast is free for this memory-bound kernel.
    x = x_ref[...].astype(jnp.float32)
    y = (x - black_level) * scale_inv
    o_ref[...] = jnp.clip(y, 0.0, 1.0).astype(o_ref.dtype)


def _choose_tm(rows, bytes_per_row):
    """Pick the sublane block size (rows per grid step)."""
    tm = max(8, (_TARGET_BLOCK_BYTES // max(1, bytes_per_row)) // 8 * 8)
    tm = min(tm, rows)          # tm is a multiple of 8, or the full extent.
    # v7x has 2 TensorCores: make sure the "parallel" row axis has >= 2 grid
    # blocks whenever there are at least two full sublane tiles of rows.
    if rows >= 16 and pl.cdiv(rows, tm) < 2:
        tm = max(8, ((-(-rows // 2)) + 7) // 8 * 8)
    return tm


def black_level_compensation(bayer, *, bit=10, black_level=64,
                             out_dtype=jnp.float32):
    """Apply black level compensation.

    Args:
        bayer: [B, 1, H, W] n-bit bayer image (any float or integer dtype).
        bit: bit depth of the sensor data.
        black_level: black level value.
        out_dtype: output dtype. float32 by default (matches the PyTorch
            module); bfloat16/float16 cut HBM write traffic ~33% if
            downstream tolerates reduced precision.

    Returns:
        [B, C, H, W] image in [0, 1] with dtype `out_dtype`.
    """
    B, C, H, W = bayer.shape
    denom = 2 ** bit - 1 - black_level
    if denom <= 0:
        raise ValueError(
            f"black_level ({black_level}) must be < 2**bit - 1 ({2 ** bit - 1})"
        )
    black_level_f = float(black_level)
    scale_inv = 1.0 / float(denom)

    in_item = jnp.dtype(bayer.dtype).itemsize
    out_item = jnp.dtype(out_dtype).itemsize

    # --- Data plumbing: present a 2-D (rows, lanes) view.
    direct = (W % 128 == 0) or (W >= 512)
    if direct:
        # Free view: merge leading/major dims, keep full W as the lane dim
        # (block last dim == full array dim is legal even if W % 128 != 0).
        lanes = W
        rows = B * C * H
        x2d = bayer.reshape(rows, lanes)
        n_pad = 0
    else:
        # Tiny-W fallback: repack into a lane-dense slab so stores are not
        # heavily masked. This costs one relayout + pad; only worth it when
        # the natural lane dim would be very small.
        n = B * C * H * W
        lanes = 512 if n >= 512 else n
        rows = -(-n // lanes)
        n_pad = rows * lanes - n
        flat = bayer.reshape(-1)
        if n_pad:
            # Padded tail maps to clamp((0 - bl) * s) = 0 and is sliced off.
            flat = jnp.pad(flat, (0, n_pad))
        x2d = flat.reshape(rows, lanes)

    tm = _choose_tm(rows, lanes * (in_item + out_item))
    grid_m = pl.cdiv(rows, tm)

    kernel = functools.partial(
        _blc_kernel, black_level=black_level_f, scale_inv=scale_inv
    )

    cost = pl.CostEstimate(
        flops=2 * rows * lanes,
        transcendentals=0,
        bytes_accessed=rows * lanes * (in_item + out_item),
    )

    out2d = pl.pallas_call(
        kernel,
        out_shape=jax.ShapeDtypeStruct((rows, lanes), out_dtype),
        grid_spec=pl.GridSpec(
            grid=(grid_m,),
            in_specs=[pl.BlockSpec((tm, lanes), lambda i: (i, 0))],
            out_specs=pl.BlockSpec((tm, lanes), lambda i: (i, 0)),
        ),
        compiler_params=pltpu.CompilerParams(
            dimension_semantics=("parallel",),
        ),
        cost_estimate=cost,
    )(x2d)

    if direct:
        return out2d.reshape(B, C, H, W)
    out = out2d.reshape(-1)
    if n_pad:
        out = out[: B * C * H * W]
    return out.reshape(B, C, H, W)
    # TODO(synk): fuse this per-pixel stage with adjacent ISP stages (white
    # balance, demosaic prep) into one pallas_call to avoid full-frame HBM
    # round trips between stages.


if __name__ == "__main__":
    key = jax.random.PRNGKey(0)
    k1, k2 = jax.random.split(key)
    bit, black_level = 10, 64
    denom = 2 ** bit - 1 - black_level

    # --- Case 1: tiny-W fallback path, float32 input ([B, 1, H, W]).
    B, C, H, W = 2, 1, 16, 16
    bayer_f32 = jax.random.uniform(
        k1, (B, C, H, W), minval=float(black_level) - 8.0,
        maxval=float(2 ** bit - 1), dtype=jnp.float32,
    )
    out = black_level_compensation(bayer_f32, bit=bit, black_level=black_level)
    out = jax.block_until_ready(out)
    ref = jnp.clip((bayer_f32 - black_level) / denom, 0.0, 1.0)
    assert out.shape == (B, C, H, W)
    assert out.dtype == jnp.float32
    assert jnp.allclose(out, ref, atol=1e-6), "float32 tiny-W path mismatch"

    # --- Case 2: same shape, native narrow sensor dtype (uint16 in HBM).
    bayer_u16 = jnp.round(bayer_f32).astype(jnp.uint16)
    out_u16 = black_level_compensation(
        bayer_u16, bit=bit, black_level=black_level
    )
    out_u16 = jax.block_until_ready(out_u16)
    ref_u16 = jnp.clip(
        (bayer_u16.astype(jnp.float32) - black_level) / denom, 0.0, 1.0
    )
    assert jnp.allclose(out_u16, ref_u16, atol=1e-6), "uint16 path mismatch"

    # --- Case 3: direct (no-repack) path, W multiple of 128, 2 grid blocks.
    B2, C2, H2, W2 = 1, 1, 32, 128
    bayer2 = jax.random.uniform(
        k2, (B2, C2, H2, W2), minval=float(black_level) - 8.0,
        maxval=float(2 ** bit - 1), dtype=jnp.float32,
    )
    out2 = black_level_compensation(bayer2, bit=bit, black_level=black_level)
    out2 = jax.block_until_ready(out2)
    ref2 = jnp.clip((bayer2 - black_level) / denom, 0.0, 1.0)
    assert out2.shape == (B2, C2, H2, W2)
    assert jnp.allclose(out2, ref2, atol=1e-6), "direct path mismatch"

    print("KERNEL_OK")
</pallas_src>

<mosaic_0001>
module attributes {stable_mosaic.version = 11 : i64} {
  func.func @_blc_kernel(%arg0: i32, %arg1: memref<1x512xf32, #tpu.memory_space<vmem>>, %arg2: memref<1x512xf32, #tpu.memory_space<vmem>>) attributes {dimension_semantics = [#tpu.dimension_semantics<parallel>], iteration_bounds = array<i64: 1>, scalar_prefetch = 0 : i64, scratch_operands = 0 : i64, tpu.core_type = #tpu.core_type<tc>, window_params = [{transform_indices = @transform_0, window_bounds = array<i64: 1, 512>}, {transform_indices = @transform_1, window_bounds = array<i64: 1, 512>}]} {
    %c0 = arith.constant 0 : index
    %c0_0 = arith.constant 0 : index
    %0 = vector.load %arg1[%c0, %c0_0] : memref<1x512xf32, #tpu.memory_space<vmem>>, vector<1x512xf32>
    %cst = arith.constant 6.400000e+01 : f32
    %1 = vector.broadcast %cst : f32 to vector<1x512xf32>
    %2 = arith.subf %0, %1 : vector<1x512xf32>
    %cst_1 = arith.constant 0.00104275288 : f32
    %3 = vector.broadcast %cst_1 : f32 to vector<1x512xf32>
    %4 = arith.mulf %2, %3 : vector<1x512xf32>
    %cst_2 = arith.constant 0.000000e+00 : f32
    %cst_3 = arith.constant 1.000000e+00 : f32
    %5 = vector.broadcast %cst_2 : f32 to vector<1x512xf32>
    %6 = arith.maximumf %5, %4 : vector<1x512xf32>
    %7 = vector.broadcast %cst_3 : f32 to vector<1x512xf32>
    %8 = arith.minimumf %7, %6 : vector<1x512xf32>
    %c0_4 = arith.constant 0 : index
    %c0_5 = arith.constant 0 : index
    %9 = vector.load %arg2[%c0_4, %c0_5] : memref<1x512xf32, #tpu.memory_space<vmem>>, vector<1x512xf32>
    tpu.vector_store %arg2[%c0_4, %c0_5], %8 {strides = array<i32>} : memref<1x512xf32, #tpu.memory_space<vmem>>, vector<1x512xf32>,
    return
  }
  func.func @transform_0(%arg0: i32) -> (i32, i32) {
    %c0_i32 = arith.constant 0 : i32
    %c0_i32_0 = arith.constant 0 : i32
    return %arg0, %c0_i32 : i32, i32
  }
  func.func @transform_1(%arg0: i32) -> (i32, i32) {
    %c0_i32 = arith.constant 0 : i32
    %c0_i32_0 = arith.constant 0 : i32
    return %arg0, %c0_i32 : i32, i32
  }
}

</mosaic_0001>

<bundles_post_ra>
// kernel: tpu_custom_call.1
= control target key start
LH: loop header
LB: loop body
LE: loop exit
PB: predicated region body
PF: predicated region fallthrough
CT: control target
= control target key end

     0   :  { %6 = vsyncpa [#allocation3], 0  ;;  %s133_s0 = inlined_call_operand.hbm [shape: f32[1,512], index: 0, kind: input, shape index: {}]   ;;  %s134_s1 = inlined_call_operand.hbm [shape: f32[1,512], index: 1, kind: output, shape index: {}]  }
   0x1   :  { %7 = vsyncpa [#allocation4], 0  ;;  %s97_s6 = smov [#allocation2]   ;;  %s49_s10 = scalar_lea.hbm %s133_s0, 64 }
   0x2   :  { %s14_s7 = sshll.u32 %s97_s6, 4  ;;  %p50_p0 = scmp.ne.s32.totalorder %s133_s0, %s49_s10  ;;  %s15_s7 = int_to_ptr.vmem [resolvable:$true] %s14_s7 }
   0x3   :  { %p53_p1 = scmp.lt.u32.totalorder %s49_s10, %s133_s0 }
   0x5   :  { %p55_p2 = pnand %p53_p1, %p50_p0 }
   0x7   :  { %58 = shalt.err (!%p55_p2)
}
   0x8   :  { %s59_s15 = scalar_lea.vmem %s15_s7, 64  ;;  %p64_p4 = scmp.lt.s32.totalorder %s15_s7, %s15_s7 }
   0x9   :  { %p60_p3 = scmp.ne.s32.totalorder %s15_s7, %s59_s15  ;;  %p65_p5 = scmp.lt.s32.totalorder %s59_s15, %s59_s15 }
   0xb   :  { %p66_p6 = por %p65_p5, %p64_p4 }
   0xd   :  { %p67_p7 = pnand %p66_p6, %p60_p3 }
   0xf   :  { %70 = shalt.err (!%p67_p7)
}
  0x10   :  { %17 = dma.hbm_to_vmem [thread:$0]  %s133_s0, 64, %s15_s7, [#allocation3]  }
  0x11   :  { %93 = dma.done.wait [#allocation3], 64  }
  0x12   :  { %94 = vsyncadd [#allocation3], 4294967232  ;;  %v21_v0 = vld [vmem:[#allocation2] sm:$0xf]  ;;  %v26_v2 = vlaneseq  ;;  %s98_s18 = smov [#allocation5]  }
  0x13   :  { %v46_v1 = vadd.f32 -64.0, %v21_v0  ;;  %s37_s19 = sshll.u32 %s98_s18, 4  ;;  %s38_s19 = int_to_ptr.vmem [resolvable:$true] %s37_s19 }
  0x14   :  { %vm28_vm0 = vcmp.lt.s32.totalorder %v26_v2, 512  ;;  %s71_s20 = scalar_lea.vmem %s38_s19, 64  ;;  %p76_p9 = scmp.lt.s32.totalorder %s38_s19, %s38_s19 }
  0x15   :  { %v23_v3 = vmul.f32 0.0010427529, %v46_v1  ;;  %p72_p8 = scmp.ne.s32.totalorder %s38_s19, %s71_s20  ;;  %p77_p10 = scmp.lt.s32.totalorder %s71_s20, %s71_s20 }
  0x17   :  { %v24_v4 = vmax.f32 %v23_v3, 0.0  ;;  %p78_p11 = por %p77_p10, %p76_p9 }
  0x19   :  { %v25_v5 = vmin.f32 %v24_v4, 1.0  ;;  %p79_p12 = pnand %p78_p11, %p72_p8 }
  0x1b   :  { %30 = vst.msk [vmem:[#allocation5] sm:$0xf] %vm28_vm0, %v25_v5 }
  0x1c   :  { %82 = shalt.err (!%p79_p12)
}
  0x1d   :  { %s83_s22 = scalar_lea.hbm %s134_s1, 64 }
  0x1e   :  { %p84_p13 = scmp.ne.s32.totalorder %s134_s1, %s83_s22  ;;  %p87_p0 = scmp.lt.u32.totalorder %s83_s22, %s134_s1 }
  0x20   :  { %p89_p1 = pnand %p87_p0, %p84_p13 }
  0x22   :  { %92 = shalt.err (!%p89_p1)
}
  0x23   :  { %40 = dma.vmem_to_hbm [thread:$0]  %s38_s19, 64, %s134_s1, [#allocation4]  }
  0x24   :  { %95 = dma.done.wait [#allocation4], 64  }
  0x25   :  { %96 = vsyncadd [#allocation4], 4294967232 }
  0x26   :  { %44 = vsyncpa [#allocation3], 1 }
  0x27   :  { %45 = vsyncpa [#allocation4], 1 }

</bundles_post_ra>
